<compile_context>
chip_gen: v7x
topology: tpu7x:2x2x1
jax: 0.10.0
libtpu: 0.0.40
codegen_flags: <defaults>
</compile_context>

<pallas_src>
import math

import jax
import jax.numpy as jnp
from jax.experimental import pallas as pl
from jax.experimental.pallas import tpu as pltpu

_INV_SQRT2 = 1.0 / math.sqrt(2.0)


def _mlp_kernel(x_ref, w1_ref, b1_ref, w2_ref, b2_ref, o_ref):
    # x_ref : (C_in,  tm)   tile of pixels (lane axis = pixels)
    # w1_ref: (C_mid, C_in) full, conv layout (out, in)
    # b1_ref: (C_mid, 1)    full
    # w2_ref: (C_out, C_mid) full, conv layout (out, in)
    # b2_ref: (C_out, 1)    full
    # o_ref : (C_out, tm)   tile of output pixels (lane-dense store)
    x = x_ref[...]

    # First 1x1 conv: (C_mid, C_in) @ (C_in, tm) -> f32 accumulation.
    h = jnp.dot(w1_ref[...], x, preferred_element_type=jnp.float32)
    h = h + b1_ref[...].astype(jnp.float32)

    # Exact (erf-based) GELU, matching torch.nn.functional.gelu default.
    h = 0.5 * h * (1.0 + jax.lax.erf(h * jnp.float32(_INV_SQRT2)))

    # Second 1x1 conv. Keep MXU operands in the weights' native dtype
    # (no-op cast for f32; downcast for bf16 weights), accumulate in f32.
    y = jnp.dot(w2_ref[...], h.astype(w2_ref.dtype),
                preferred_element_type=jnp.float32)
    y = y + b2_ref[...].astype(jnp.float32)

    o_ref[...] = y.astype(o_ref.dtype)


def mlp_pallas(x_nchw, w1_conv, b1, w2_conv, b2, *, tm=1024):
    """x_nchw: (B, C_in, H, W).
    w1_conv: (C_mid, C_in)  == mlp1.weight[:, :, 0, 0]
    b1     : (C_mid,)
    w2_conv: (C_out, C_mid) == mlp2.weight[:, :, 0, 0]
    b2     : (C_out,)
    Returns (B, C_out, H, W)."""
    B, C_in, H, W = x_nchw.shape
    C_mid, c_in_w = w1_conv.shape
    assert c_in_w == C_in
    C_out, c_mid_w = w2_conv.shape
    assert c_mid_w == C_mid
    HW = H * W

    # Free reshape (row-major contiguous): pixels become the lane-contiguous
    # last axis, channels stay as the sublane axis.  No transpose.
    x = x_nchw.reshape(B, C_in, HW)

    # Pixel tile: either the whole spatial extent, or a multiple of 128.
    if HW <= tm:
        tm_eff = HW
    else:
        tm_eff = tm
        assert tm_eff % 128 == 0, "pixel tile must be a multiple of 128"
    n_ptiles = pl.cdiv(HW, tm_eff)  # partial last tile handled by Pallas masking
    grid = (B, n_ptiles)

    out = pl.pallas_call(
        _mlp_kernel,
        out_shape=jax.ShapeDtypeStruct((B, C_out, HW), x.dtype),
        grid_spec=pltpu.PrefetchScalarGridSpec(
            num_scalar_prefetch=0,
            grid=grid,
            in_specs=[
                # activation tile: squeeze batch dim, (C_in, tm_eff) in kernel
                pl.BlockSpec((None, C_in, tm_eff), lambda b, p: (b, 0, p)),
                # weights / biases: constant index map -> fetched once
                pl.BlockSpec((C_mid, C_in), lambda b, p: (0, 0)),
                pl.BlockSpec((C_mid, 1), lambda b, p: (0, 0)),
                pl.BlockSpec((C_out, C_mid), lambda b, p: (0, 0)),
                pl.BlockSpec((C_out, 1), lambda b, p: (0, 0)),
            ],
            out_specs=pl.BlockSpec((None, C_out, tm_eff),
                                   lambda b, p: (b, 0, p)),
        ),
        compiler_params=pltpu.CompilerParams(
            dimension_semantics=("parallel", "parallel")),
    )(x, w1_conv, b1.reshape(C_mid, 1), w2_conv, b2.reshape(C_out, 1))

    return out.reshape(B, C_out, H, W)


def init_mlp_params(key, in_channels, mid_channels, out_channels,
                    dtype=jnp.float32):
    """Deterministic init mimicking nn.Conv2d's kaiming-uniform ranges.
    Returns conv-layout weights: w1_conv (C_mid, C_in), w2_conv (C_out, C_mid)."""
    k1, k2, k3, k4 = jax.random.split(key, 4)
    # Conv2d(in, mid, 1): weight (mid, in, 1, 1) -> fan_in = in
    bound1 = 1.0 / math.sqrt(in_channels)
    w1_conv = jax.random.uniform(k1, (mid_channels, in_channels),
                                 minval=-bound1, maxval=bound1, dtype=dtype)
    b1 = jax.random.uniform(k2, (mid_channels,),
                            minval=-bound1, maxval=bound1, dtype=dtype)
    # Conv2d(mid, out, 1): fan_in = mid
    bound2 = 1.0 / math.sqrt(mid_channels)
    w2_conv = jax.random.uniform(k3, (out_channels, mid_channels),
                                 minval=-bound2, maxval=bound2, dtype=dtype)
    b2 = jax.random.uniform(k4, (out_channels,),
                            minval=-bound2, maxval=bound2, dtype=dtype)
    return w1_conv, b1, w2_conv, b2


def mlp_reference(x_nchw, w1_conv, b1, w2_conv, b2):
    """Pure-JAX reference of the PyTorch forward (channels-first einsum)."""
    h = jnp.einsum("mc,bchw->bmhw", w1_conv, x_nchw) + b1[None, :, None, None]
    h = jax.nn.gelu(h, approximate=False)
    y = jnp.einsum("om,bmhw->bohw", w2_conv, h) + b2[None, :, None, None]
    return y


if __name__ == "__main__":
    key = jax.random.PRNGKey(0)
    kx, kp = jax.random.split(key)

    B, C_in, H, W = 2, 4, 16, 16
    C_mid, C_out = 32, 4

    x = jax.random.normal(kx, (B, C_in, H, W), dtype=jnp.float32)
    w1_conv, b1, w2_conv, b2 = init_mlp_params(kp, C_in, C_mid, C_out)

    out = mlp_pallas(x, w1_conv, b1, w2_conv, b2)
    out = jax.block_until_ready(out)

    ref = mlp_reference(x, w1_conv, b1, w2_conv, b2)
    assert out.shape == (B, C_out, H, W)
    assert jnp.allclose(out, ref, atol=1e-5, rtol=1e-5)

    print("KERNEL_OK")
</pallas_src>

<mosaic_0001>
module attributes {stable_mosaic.version = 11 : i64} {
  func.func @_mlp_kernel(%arg0: i32, %arg1: i32, %arg2: memref<1x4x256xf32, #tpu.memory_space<vmem>>, %arg3: memref<32x4xf32, #tpu.memory_space<vmem>>, %arg4: memref<32x1xf32, #tpu.memory_space<vmem>>, %arg5: memref<4x32xf32, #tpu.memory_space<vmem>>, %arg6: memref<4x1xf32, #tpu.memory_space<vmem>>, %arg7: memref<1x4x256xf32, #tpu.memory_space<vmem>>) attributes {dimension_semantics = [#tpu.dimension_semantics<parallel>, #tpu.dimension_semantics<parallel>], iteration_bounds = array<i64: 2, 1>, scalar_prefetch = 0 : i64, scratch_operands = 0 : i64, tpu.core_type = #tpu.core_type<tc>, window_params = [{transform_indices = @transform_0, window_bounds = array<i64: 1, 4, 256>}, {pipeline_mode = #tpu.pipeline_mode<synchronous>, transform_indices = @transform_1, window_bounds = array<i64: 32, 4>}, {pipeline_mode = #tpu.pipeline_mode<synchronous>, transform_indices = @transform_2, window_bounds = array<i64: 32, 1>}, {pipeline_mode = #tpu.pipeline_mode<synchronous>, transform_indices = @transform_3, window_bounds = array<i64: 4, 32>}, {pipeline_mode = #tpu.pipeline_mode<synchronous>, transform_indices = @transform_4, window_bounds = array<i64: 4, 1>}, {transform_indices = @transform_5, window_bounds = array<i64: 1, 4, 256>}]} {
    %c0 = arith.constant 0 : index
    %c0_0 = arith.constant 0 : index
    %c0_1 = arith.constant 0 : index
    %0 = vector.load %arg2[%c0, %c0_0, %c0_1] : memref<1x4x256xf32, #tpu.memory_space<vmem>>, vector<1x4x256xf32>
    %1 = vector.shape_cast %0 : vector<1x4x256xf32> to vector<4x256xf32>
    %c0_2 = arith.constant 0 : index
    %c0_3 = arith.constant 0 : index
    %2 = vector.load %arg3[%c0_2, %c0_3] : memref<32x4xf32, #tpu.memory_space<vmem>>, vector<32x4xf32>
    %cst = arith.constant dense<0.000000e+00> : vector<32x256xf32>
    %3 = tpu.matmul %2, %1, %cst {dimension_numbers = #tpu.dot_dimension_numbers<[1], [0], [0], [1], [0, 0, 1, 1], [], []>} : vector<32x4xf32>, vector<4x256xf32>, vector<32x256xf32> -> vector<32x256xf32>
    %c0_4 = arith.constant 0 : index
    %c0_5 = arith.constant 0 : index
    %4 = vector.load %arg4[%c0_4, %c0_5] : memref<32x1xf32, #tpu.memory_space<vmem>>, vector<32x1xf32>
    %5 = vector.broadcast %4 : vector<32x1xf32> to vector<32x256xf32>
    %6 = arith.addf %3, %5 : vector<32x256xf32>
    %cst_6 = arith.constant 5.000000e-01 : f32
    %7 = vector.broadcast %cst_6 : f32 to vector<32x256xf32>
    %8 = arith.mulf %7, %6 : vector<32x256xf32>
    %cst_7 = arith.constant 0.707106769 : f32
    %9 = vector.broadcast %cst_7 : f32 to vector<32x256xf32>
    %10 = arith.mulf %6, %9 : vector<32x256xf32>
    %11 = math.erf %10 : vector<32x256xf32>
    %cst_8 = arith.constant 1.000000e+00 : f32
    %12 = vector.broadcast %cst_8 : f32 to vector<32x256xf32>
    %13 = arith.addf %12, %11 : vector<32x256xf32>
    %14 = arith.mulf %8, %13 : vector<32x256xf32>
    %c0_9 = arith.constant 0 : index
    %c0_10 = arith.constant 0 : index
    %15 = vector.load %arg5[%c0_9, %c0_10] : memref<4x32xf32, #tpu.memory_space<vmem>>, vector<4x32xf32>
    %cst_11 = arith.constant dense<0.000000e+00> : vector<4x256xf32>
    %16 = tpu.matmul %15, %14, %cst_11 {dimension_numbers = #tpu.dot_dimension_numbers<[1], [0], [0], [1], [0, 0, 1, 1], [], []>} : vector<4x32xf32>, vector<32x256xf32>, vector<4x256xf32> -> vector<4x256xf32>
    %c0_12 = arith.constant 0 : index
    %c0_13 = arith.constant 0 : index
    %17 = vector.load %arg6[%c0_12, %c0_13] : memref<4x1xf32, #tpu.memory_space<vmem>>, vector<4x1xf32>
    %18 = vector.broadcast %17 : vector<4x1xf32> to vector<4x256xf32>
    %19 = arith.addf %16, %18 : vector<4x256xf32>
    %c0_14 = arith.constant 0 : index
    %c0_15 = arith.constant 0 : index
    %c0_16 = arith.constant 0 : index
    %20 = vector.load %arg7[%c0_14, %c0_15, %c0_16] : memref<1x4x256xf32, #tpu.memory_space<vmem>>, vector<1x4x256xf32>
    %21 = vector.shape_cast %20 : vector<1x4x256xf32> to vector<4x256xf32>
    %22 = vector.shape_cast %19 : vector<4x256xf32> to vector<1x4x256xf32>
    tpu.vector_store %arg7[%c0_14, %c0_15, %c0_16], %22 {strides = array<i32>} : memref<1x4x256xf32, #tpu.memory_space<vmem>>, vector<1x4x256xf32>,
    return
  }
  func.func @transform_0(%arg0: i32, %arg1: i32) -> (i32, i32, i32) {
    %c0_i32 = arith.constant 0 : i32
    %c0_i32_0 = arith.constant 0 : i32
    return %arg0, %c0_i32, %arg1 : i32, i32, i32
  }
  func.func @transform_1(%arg0: i32, %arg1: i32) -> (i32, i32) {
    %c0_i32 = arith.constant 0 : i32
    %c0_i32_0 = arith.constant 0 : i32
    %c0_i32_1 = arith.constant 0 : i32
    return %c0_i32, %c0_i32_0 : i32, i32
  }
  func.func @transform_2(%arg0: i32, %arg1: i32) -> (i32, i32) {
    %c0_i32 = arith.constant 0 : i32
    %c0_i32_0 = arith.constant 0 : i32
    %c0_i32_1 = arith.constant 0 : i32
    return %c0_i32, %c0_i32_0 : i32, i32
  }
  func.func @transform_3(%arg0: i32, %arg1: i32) -> (i32, i32) {
    %c0_i32 = arith.constant 0 : i32
    %c0_i32_0 = arith.constant 0 : i32
    %c0_i32_1 = arith.constant 0 : i32
    return %c0_i32, %c0_i32_0 : i32, i32
  }
  func.func @transform_4(%arg0: i32, %arg1: i32) -> (i32, i32) {
    %c0_i32 = arith.constant 0 : i32
    %c0_i32_0 = arith.constant 0 : i32
    %c0_i32_1 = arith.constant 0 : i32
    return %c0_i32, %c0_i32_0 : i32, i32
  }
  func.func @transform_5(%arg0: i32, %arg1: i32) -> (i32, i32, i32) {
    %c0_i32 = arith.constant 0 : i32
    %c0_i32_0 = arith.constant 0 : i32
    return %arg0, %c0_i32, %arg1 : i32, i32, i32
  }
}

</mosaic_0001>

<bundles_post_ra>
// kernel: tpu_custom_call.1
= control target key start
LH: loop header
LB: loop body
LE: loop exit
PB: predicated region body
PF: predicated region fallthrough
CT: control target
= control target key end

     0   :  { %10 = vsyncpa [#allocation3], 0  ;;  %s973_s0 = inlined_call_operand.vmem [shape: f32[2,4,256], index: 0, kind: input, shape index: {}]   ;;  %s974_s1 = inlined_call_operand.vmem [shape: f32[32,4], index: 1, kind: input, shape index: {}]   ;;  %s975_s2 = inlined_call_operand.vmem [shape: f32[32,1], index: 2, kind: input, shape index: {}]   ;;  %s976_s3 = inlined_call_operand.vmem [shape: f32[4,32], index: 3, kind: input, shape index: {}]   ;;  %s977_s4 = inlined_call_operand.vmem [shape: f32[4,1], index: 4, kind: input, shape index: {}]   ;;  %s978_s5 = inlined_call_operand.hbm [shape: f32[2,4,256], index: 5, kind: output, shape index: {}]  }
   0x1   :  { %12 = vsyncpa [#allocation3 + $0x1], 0  ;;  %s831_s18 = smov 0   ;;  %s833_s19 = smov 0  }
   0x2   :  { %s835_s20 = smov 0   ;;  %s837_s21 = smov 0  }
   0x3   :  { %s839_s22 = smov 0   ;;  %s841_s23 = smov 0  }
   0x4 LB: > { %s612_s24 = sadd.s32 4294967295, %s796_s23   ;;  %s613_s25 = sadd.s32 4294967294, %s796_s23   ;;  %s796_s23 = sphi %s841_s23, %s18_s23   ;;  %s792_s22 = sphi %s839_s22, %s985_s22   ;;  %s788_s21 = sphi %s837_s21, %s984_s21   ;;  %s784_s20 = sphi %s835_s20, %s983_s20   ;;  %s780_s19 = sphi %s833_s19, %s982_s19   ;;  %s776_s18 = sphi %s831_s18, %s981_s18  }
   0x5   : > { %s30_s26 = sadd.s32 1, %s792_s22  ;;  %s151_s27 = sadd.s32 1, %s784_s20 }
   0x6   : > { %p32_p0 = scmp.ge.s32.totalorder %s30_s26, 2  ;;  %p161_p1 = scmp.ne.s32.totalorder %s784_s20, %s780_s19 }
   0x7   : > { %p162_p2 = scmp.eq.s32.totalorder %s612_s24, 1  ;;  %p167_p3 = scmp.ne.s32.totalorder %s780_s19, %s776_s18 }
   0x8   : > { %s987_s26 = smov (%p32_p0, %s30_s26), 0  ;;  %p168_p5 = scmp.eq.s32.totalorder %s613_s25, 1 }
   0x9   : > { %p871_p4 = por %p162_p2, %p161_p1  ;;  %s146_s29 = ssub.s32 %s792_s22, %s987_s26 }
   0xa   : > { %p616_p6 = scmp.ge.s32.totalorder %s796_s23, 1  ;;  %p149_p7 = scmp.eq.s32.totalorder %s146_s29, 0 }
   0xb   : > { %p878_p8 = por %p168_p5, %p167_p3  ;;  %p211_p9 = scmp.lt.s32.totalorder %s796_s23, 3 }
   0xc   : > { %s884_s6 = scalar_select %p149_p7, %s784_s20, %s151_s27  }
   0xd   : > { %p212_p10 = pnand %p616_p6, %p211_p9 }
   0xe   : > { %p244_p11 = scmp.lt.s32.totalorder (!%p212_p10), %s788_s21, 1  ;;  %v798_v0 = vmov (!%p212_p10), 0.0   ;;  %v259_v1 = vld [vmem:[%s975_s2] sm:$0xff] (!%p212_p10)  ;;  %v799_v2 = vmov (!%p212_p10), 0   ;;  %v261_v3 = vld [vmem:[%s975_s2 + $0x10] sm:$0xff] (!%p212_p10)  ;;  %v260_v4 = vld [vmem:[%s975_s2 + $0x8] sm:$0xff] (!%p212_p10) }
   0xf   : > { %215 = sbr.rel (%p212_p10) target bundleno = 512 (0x200), region = 40  ;;  %367 = vmatprep.mubr.f32.mxu0 (!%p212_p10), %v798_v0  ;;  %507 = vmatprep.mubr.f32.mxu1 (!%p212_p10), %v798_v0  ;;  %v262_v5 = vld [vmem:[%s975_s2 + $0x18] sm:$0xff] (!%p212_p10)  ;;  %vm298_vm0 = vcmask (!%p212_p10), 1043456   ;;  %v255_v8 = vld [vmem:[%s974_s1] sm:$0xff] (!%p212_p10)  ;;  %vm285_vm1 = vcmask (!%p212_p10), 31744   ;;  %v256_v10 = vld [vmem:[%s974_s1 + $0x8] sm:$0xff] (!%p212_p10) }
  0x10   : > { %699 = vset.pattern.permute.xlu0 (!%p212_p10), %v799_v2  ;;  %700 = vset.pattern.permute.xlu1 (!%p212_p10), %v799_v2  ;;  %v433_v9 = vld [vmem:[%s977_s4] sm:$0xf] (!%p212_p10)  ;;  %v257_v11 = vld [vmem:[%s974_s1 + $0x10] sm:$0xff] (!%p212_p10)  ;;  %v258_v12 = vld [vmem:[%s974_s1 + $0x18] sm:$0xff] (!%p212_p10)  ;;  %vm439_vm2 = vcmask (!%p212_p10), 261120   ;;  %s240_s17 = sand.u32 (!%p212_p10), 1, %s780_s19  }
  0x11   : > { %265 = vperm.xlu0 (!%p212_p10), %699, %v259_v1   ;;  %275 = vperm.xlu1 (!%p212_p10), %700, %v261_v3   ;;  %s617_s24 = sshll.u32 (!%p212_p10), %s240_s17, 3  ;;  %s520_s10 = scalar_lea.sflag (!%p212_p10), [#allocation3], %s240_s17 }
  0x12   : > { %s242_s27 = scalar_lea.vmem (!%p212_p10), [#allocation2], %s617_s24 }
  0x13   : > { %s536_s29 = sshll.u32 (!%p212_p10), %s242_s27, 4  ;;  %s928_s29 = int_to_ptr.vmem [resolvable:$true] %s536_s29 }
  0x14   : > { %s718_s11 = scalar_lea.vmem (!%p212_p10), %s928_s29, 128 }
  0x15   : > { %270 = vperm.xlu0 (!%p212_p10), %699, %v260_v4   ;;  %280 = vperm.xlu1 (!%p212_p10), %700, %v262_v5   ;;  %p719_p12 = scmp.ne.s32.totalorder (!%p212_p10), %s928_s29, %s718_s11 }
  0x16   : > { %s245_s9 = scalar_select %p244_p11, %s788_s21, 1 }
  0x17   : > { %p720_p13 = pnand %p719_p12, %p871_p4 }
  0x18   : > { %s632_s12 = sshll.u32 %s245_s9, 3 }
  0x19   : > { %s251_s25 = scalar_lea.vmem %s973_s0, %s632_s12  ;;  %436 = vperm.xlu0 %699, %v433_v9   ;;  %p721_p0 = pneg %p720_p13 }
  0x1a   : > { %v254_v6 = vld [vmem:[%s251_s25] sm:$0xff]  ;;  %s633_s25 = sshll.u32 %s788_s21, 7  ;;  %s800_s21 = smov [#allocation2]  }
  0x1b   : > { %v284_v7 = vcombine.high %v254_v6, %v254_v6  ;;  %s926_s9 = scalar_lea.hbm %s978_s5, %s633_s25  ;;  %s722_s12 = sshll.u32 %s800_s21, 4  ;;  %s723_s12 = int_to_ptr.vmem [resolvable:$false] %s722_s12 }
  0x1c   : > { %s724_s13 = scalar_lea.vmem %s723_s12, 256  ;;  %p725_p1 = scmp.lt.s32.totalorder %s928_s29, %s723_s12 }
  0x1d   : > { %620 = vmatprep.subr.msk.mxu0 %vm298_vm0, %v284_v7  ;;  %p726_p2 = scmp.lt.s32.totalorder %s724_s13, %s718_s11 }
  0x1e   : > { %621 = vmatpush1.msk.msra.mxu0 %vm298_vm0, %v254_v6 }
  0x1f   : > { %622 = vmatmul.mubr.msk.f32.vlgmr.msra.gmra.mrb[0].mxu0 %vm285_vm1, %v255_v8  ;;  %p727_p3 = por %p726_p2, %p725_p1 }
  0x20   : > { %373 = vmatprep.mubr.f32.mxu0 %v798_v0 }
  0x21   : > { %p728_p5 = pnand %p727_p3, %p721_p0 }
  0x23   : > { %623 = vmatmul.mubr.msk.f32.gmra.mrb[2].mxu0 %vm285_vm1, %v256_v10 }
  0x24   : > { %379 = vmatprep.mubr.f32.mxu0 %v798_v0 }
  0x27   : > { %624 = vmatmul.mubr.msk.f32.gmra.mrb[4].mxu0 %vm285_vm1, %v257_v11 }
  0x28   : > { %385 = vmatprep.mubr.f32.mxu0 %v798_v0 }
  0x2b   : > { %625 = vmatmul.mubr.msk.f32.gmra.mrb[6].mxu0 %vm285_vm1, %v258_v12 }
  0x90   : > { %v266_v13 = vpop.permute.xlu0 %265  ;;  %v276_v24 = vpop.permute.xlu1 %275 }
  0x94   : > { %v271_v19 = vpop.permute.xlu0 %270  ;;  %v281_v33 = vpop.permute.xlu1 %280 }
  0xf2   : > { %v369_v14 = vpop.f32.mrb[0].mxu0 }
  0xf3   : > { %v370_v15 = vadd.f32 %v369_v14, %v266_v13  ;;  %v371_v16 = vpop.f32.mrb[1].mxu0  ;;  %v437_v14 = vpop.permute.xlu0 %436 }
  0xf4   : > { %v372_v17 = vadd.f32 %v371_v16, %v266_v13  ;;  %v432_v13 = vld [vmem:[%s976_s3] sm:$0xf] }
  0xf5   : > { %v400_v18 = vmul.f32 0.70710677, %v370_v15  ;;  %v392_v47 = vmul.f32 0.5, %v370_v15 }
  0xf6   : > { %v401_v20 = vmul.f32 0.70710677, %v372_v17  ;;  %v375_v21 = vpop.f32.mrb[2].mxu0  ;;  %v393_v50 = vmul.f32 0.5, %v372_v17 }
  0xf7   : > { %702 = verf.f32 %v400_v18  ;;  %v376_v22 = vadd.f32 %v375_v21, %v271_v19  ;;  %v377_v23 = vpop.f32.mrb[3].mxu0 }
  0xf8   : > { %704 = verf.f32 %v401_v20  ;;  %v378_v25 = vadd.f32 %v377_v23, %v271_v19 }
  0xf9   : > { %v402_v26 = vmul.f32 0.70710677, %v376_v22  ;;  %v394_v48 = vmul.f32 0.5, %v376_v22 }
  0xfa   : > { %v403_v27 = vmul.f32 0.70710677, %v378_v25  ;;  %v381_v28 = vpop.f32.mrb[4].mxu0  ;;  %v395_v51 = vmul.f32 0.5, %v378_v25 }
  0xfb   : > { %706 = verf.f32 %v402_v26  ;;  %v382_v29 = vadd.f32 %v381_v28, %v276_v24  ;;  %v383_v30 = vpop.f32.mrb[5].mxu0 }
  0xfc   : > { %708 = verf.f32 %v403_v27  ;;  %v384_v31 = vadd.f32 %v383_v30, %v276_v24 }
  0xfd   : > { %v404_v32 = vmul.f32 0.70710677, %v382_v29  ;;  %v396_v1 = vmul.f32 0.5, %v382_v29 }
  0xfe   : > { %v405_v34 = vmul.f32 0.70710677, %v384_v31  ;;  %v387_v35 = vpop.f32.mrb[6].mxu0  ;;  %v397_v4 = vmul.f32 0.5, %v384_v31 }
  0xff   : > { %710 = verf.f32 %v404_v32  ;;  %v388_v36 = vadd.f32 %v387_v35, %v281_v33  ;;  %v389_v37 = vpop.f32.mrb[7].mxu0 }
 0x100   : > { %712 = verf.f32 %v405_v34  ;;  %v390_v38 = vadd.f32 %v389_v37, %v281_v33 }
 0x101   : > { %v703_v39 = vpop.eup %702  ;;  %v406_v40 = vmul.f32 0.70710677, %v388_v36  ;;  %v398_v2 = vmul.f32 0.5, %v388_v36 }
 0x102   : > { %v705_v41 = vpop.eup %704  ;;  %v407_v42 = vmul.f32 0.70710677, %v390_v38  ;;  %v416_v43 = vadd.f32 1.0, %v703_v39  ;;  %v399_v5 = vmul.f32 0.5, %v390_v38 }
 0x103   : > { %714 = verf.f32 %v406_v40  ;;  %v417_v45 = vadd.f32 1.0, %v705_v41 }
 0x104   : > { %716 = verf.f32 %v407_v42  ;;  %v424_v53 = vmul.f32 %v416_v43, %v392_v47 }
 0x105   : > { %v707_v44 = vpop.eup %706  ;;  %v425_v56 = vmul.f32 %v417_v45, %v393_v50 }
 0x106   : > { %v709_v46 = vpop.eup %708  ;;  %v418_v49 = vadd.f32 1.0, %v707_v44 }
 0x107   : > { %v419_v52 = vadd.f32 1.0, %v709_v46 }
 0x108   : > { %v426_v54 = vmul.f32 %v418_v49, %v394_v48 }
 0x109   : > { %v711_v55 = vpop.eup %710  ;;  %v427_v57 = vmul.f32 %v419_v52, %v395_v51 }
 0x10a   : > { %v713_v58 = vpop.eup %712  ;;  %v636_v59 = vpack.c.bf16 %v426_v54, %v424_v53  ;;  %v420_v61 = vadd.f32 1.0, %v711_v55 }
 0x10b   : > { %v634_v60 = vpack.c.bf16 %v427_v57, %v425_v56  ;;  %v421_v63 = vadd.f32 1.0, %v713_v58 }
 0x10c   : > { %v428_v7 = vmul.f32 %v420_v61, %v396_v1 }
 0x10d   : > { %v715_v62 = vpop.eup %714  ;;  %635 = vmatprep.subr.bf16.mxu1 %v634_v60  ;;  %v429_v9 = vmul.f32 %v421_v63, %v397_v4 }
 0x10e   : > { %v717_v0 = vpop.eup %716  ;;  %v422_v3 = vadd.f32 1.0, %v715_v62  ;;  %637 = vmatpush1.bf16.msra.mxu1 %v636_v59 }
 0x10f   : > { %v423_v6 = vadd.f32 1.0, %v717_v0 }
 0x110   : > { %v430_v8 = vmul.f32 %v422_v3, %v398_v2 }
 0x111   : > { %v431_v10 = vmul.f32 %v423_v6, %v399_v5 }
 0x112   : > { %v640_v11 = vpack.c.bf16 %v430_v8, %v428_v7 }
 0x113   : > { %v638_v12 = vpack.c.bf16 %v431_v10, %v429_v9 }
 0x115   : > { %639 = vmatprep.subr.bf16.mxu1 %v638_v12 }
 0x116   : > { %641 = vmatpush1.bf16.msra.mxu1 %v640_v11 }
 0x119   : > { %626 = vmatmul.mubr.msk.f32.vlgmr.msra.gmra.mrb[0].mxu1 %vm439_vm2, %v432_v13 }
 0x1ec   : > { %v509_v15 = vpop.f32.mrb[0].mxu1 }
 0x1ed   : > { %v510_v16 = vadd.f32 %v509_v15, %v437_v14  ;;  %v511_v17 = vpop.f32.mrb[1].mxu1 }
 0x1ee   : > { %v512_v18 = vadd.f32 %v511_v17, %v437_v14 }
 0x1f0   : > { %v516_v19 = vcombine.low %v510_v16, %v512_v18 }
 0x1f2   : > { %518 = vst [vmem:[%s242_s27] sm:$0xff] %v516_v19 }
 0x1f3   : > { %731 = shalt.err (!%p728_p5)
}
 0x1f4   : > { %s732_s14 = scalar_lea.hbm %s926_s9, 128  ;;  %s736_s17 = scalar_lea.hbm %s978_s5, 256 }
 0x1f5   : > { %p733_p6 = scmp.ne.s32.totalorder %s926_s9, %s732_s14  ;;  %p737_p10 = scmp.lt.u32.totalorder %s926_s9, %s978_s5 }
 0x1f6   : > { %p738_p11 = scmp.lt.u32.totalorder %s736_s17, %s732_s14  ;;  %p740_p13 = scmp.lt.u32.totalorder %s732_s14, %s926_s9 }
 0x1f7   : > { %p734_p7 = pnand %p733_p6, %p871_p4 }
 0x1f8   : > { %p739_p12 = por %p738_p11, %p737_p10 }
 0x1f9   : > { %p735_p9 = pneg %p734_p7 }
 0x1fa   : > { %p741_p0 = por %p740_p13, %p739_p12 }
 0x1fc   : > { %p742_p1 = pnand %p741_p0, %p735_p9 }
 0x1fe   : > { %745 = shalt.err (!%p742_p1)
}
 0x1ff   : > { %642 = dma.vmem_to_hbm [thread:$0]  (%p871_p4), %s928_s29, 128, %s926_s9, %s520_s10  }
 0x200 PF: > { %p648_p2 = scmp.ge.s32.totalorder %s796_s23, 2  ;;  %s548_s27 = sand.u32 1, %s776_s18  }
 0x201   : > { %s549_s7 = scalar_lea.sflag [#allocation3], %s548_s27 }
 0x202   : > { %p645_p3 = pnand %p648_p2, %p878_p8 }
 0x204   : > { %771 = dma.done.wait (!%p645_p3), %s549_s7, 128  }
 0x205   : > { %773 = vsyncadd (!%p645_p3), %s549_s7, 4294967168  ;;  %s18_s23 = sadd.s32 1, %s796_s23   ;;  %s981_s18 = smov %s780_s19 }
 0x206   : > { %p15_p5 = scmp.ge.s32.totalorder %s18_s23, 4   ;;  %s982_s19 = smov %s784_s20 }
 0x207   : > { %s983_s20 = smov %s884_s6  ;;  %s984_s21 = smov %s792_s22 }
 0x208   : > { %s985_s22 = smov %s987_s26  ;;  %17 = sbr.rel (!%p15_p5) target bundleno = 4 (0x4), region = 75 }
 0x20f   :  { %554 = vsyncpa [#allocation3], 1 }
 0x210   :  { %556 = vsyncpa [#allocation3 + $0x1], 1 }

</bundles_post_ra>
